<compile_context>
chip_gen: v7x
topology: tpu7x:2x2x1
jax: 0.10.0
libtpu: 0.0.40
codegen_flags: <defaults>
</compile_context>

<pallas_src>
import functools

import jax
import jax.numpy as jnp
from jax.experimental import pallas as pl
from jax.experimental.pallas import tpu as pltpu

H1 = 600
H2 = 100


def _round_up(x, m):
    return (x + m - 1) // m * m


def _cdiv(a, b):
    return -(-a // b)


def _mlp_kernel(x_ref, w1_ref, b1_ref, w2_ref, b2_ref, w3_ref, b3_ref, o_ref):
    # Layer 1: Linear (+ eval-mode Dropout = identity) + ReLU.
    # f32->bf16 cast of the activation tile happens here, on data the pipeline already
    # moved into VMEM (no separate HBM pass in the wrapper).
    x = x_ref[...].astype(w1_ref.dtype)
    h = jnp.dot(x, w1_ref[...], preferred_element_type=jnp.float32)
    h = jnp.maximum(h + b1_ref[...], 0.0)
    # Layer 2: Linear (+ Dropout identity) + ReLU.
    h = jnp.dot(h.astype(w2_ref.dtype), w2_ref[...],
                preferred_element_type=jnp.float32)
    h = jnp.maximum(h + b2_ref[...], 0.0)
    # Layer 3: output Linear (un-padded output width).
    out = jnp.dot(h.astype(w3_ref.dtype), w3_ref[...],
                  preferred_element_type=jnp.float32)
    o_ref[...] = (out + b3_ref[...]).astype(o_ref.dtype)


def _resident_spec(block_shape, single_buffer):
    """BlockSpec for a grid-invariant (weight/bias) operand.

    Constant index map -> never re-DMA'd across grid steps; pl.Buffered(1) additionally
    keeps a single VMEM buffer instead of the default double buffer (pure VMEM savings,
    important for v7x's 64 MiB VMEM at large num_feature).  Falls back to a plain spec
    if this jax version has no pipeline_mode / Buffered.
    """
    idx = lambda i: (0, 0)
    if single_buffer and hasattr(pl, "Buffered"):
        try:
            return pl.BlockSpec(block_shape, idx, pipeline_mode=pl.Buffered(1))
        except TypeError:
            pass
    return pl.BlockSpec(block_shape, idx)


def _choose_batch_tile(batch, num_feature, block_b):
    """16-aligned batch tile (bf16 sublane packing): large enough to amortize the
    ~0.35us/grid-step overhead, VMEM-capped for big num_feature, and balanced so that
    batch padding is less than one tile."""
    f_lanes = _round_up(max(num_feature, 1), 128)
    vmem_cap = max(16, ((4 << 20) // (f_lanes * 4)) // 16 * 16)   # ~4 MiB / x buffer
    bb_max = _round_up(max(16, min(block_b, vmem_cap, _round_up(batch, 16))), 16)
    n_tiles = _cdiv(batch, bb_max)
    return _round_up(_cdiv(batch, n_tiles), 16)


@functools.partial(
    jax.jit,
    static_argnames=("block_b", "matmul_dtype", "single_buffer_weights"))
def light_mlp4(x, w1, b1, w2, b2, w3, b3, *, block_b=1024,
               matmul_dtype=jnp.bfloat16, single_buffer_weights=True):
    """LightMLP4 forward (eval mode).

    x: [B, F] float32.  Weights are stored transposed vs PyTorch, i.e. [in, out];
    biases are [1, out].
    """
    B, F = x.shape
    O = w3.shape[1]
    assert w1.shape == (F, H1) and w2.shape == (H1, H2) and w3.shape == (H2, O)

    bb = _choose_batch_tile(B, F, block_b)
    B_p = _round_up(B, bb)
    grid = (B_p // bb,)

    # Only batch rows are ever padded (and only when B % bb != 0).  Feature dims stay
    # un-padded: full-dim block shapes are always layout-legal, Mosaic pads lanes in
    # VMEM for free, and the un-padded output avoids 8x extra writeback + wrapper slice.
    xp = x if B_p == B else jnp.pad(x, ((0, B_p - B), (0, 0)))
    w1c = w1.astype(matmul_dtype)
    w2c = w2.astype(matmul_dtype)
    w3c = w3.astype(matmul_dtype)
    b1c = b1.astype(jnp.float32)
    b2c = b2.astype(jnp.float32)
    b3c = b3.astype(jnp.float32)

    # Footprint estimate -> explicit VMEM limit (v7x: 64 MiB physical / 32 MiB default).
    wpe = jnp.dtype(matmul_dtype).itemsize
    w_bytes = (_round_up(F, 16) * _round_up(H1, 128)
               + _round_up(H1, 16) * _round_up(H2, 128)
               + _round_up(H2, 16) * _round_up(O, 128)) * wpe
    x_tile = bb * _round_up(F, 128) * 4
    o_tile = bb * _round_up(O, 128) * 4
    act = bb * (_round_up(H1, 128) + _round_up(H2, 128)) * 8
    need = w_bytes * (1 if single_buffer_weights else 2) + 2 * (x_tile + o_tile) + act
    vmem_limit = int(min(64 << 20, max(24 << 20, 2 * need)))

    flops = 2 * B_p * (F * H1 + H1 * H2 + H2 * O)
    bytes_accessed = (B_p * F * 4                          # x read once (f32, in-kernel cast)
                      + (F * H1 + H1 * H2 + H2 * O) * wpe  # resident weights
                      + (H1 + H2 + O) * 4                  # biases
                      + B_p * O * 4)                       # un-padded f32 output

    out_p = pl.pallas_call(
        _mlp_kernel,
        out_shape=jax.ShapeDtypeStruct((B_p, O), jnp.float32),
        grid_spec=pl.GridSpec(
            grid=grid,
            in_specs=[
                pl.BlockSpec((bb, F), lambda i: (i, 0)),          # x tile (f32, pipelined)
                _resident_spec((F, H1), single_buffer_weights),   # W1 (resident)
                _resident_spec((1, H1), single_buffer_weights),   # b1
                _resident_spec((H1, H2), single_buffer_weights),  # W2
                _resident_spec((1, H2), single_buffer_weights),   # b2
                _resident_spec((H2, O), single_buffer_weights),   # W3
                _resident_spec((1, O), single_buffer_weights),    # b3
            ],
            out_specs=pl.BlockSpec((bb, O), lambda i: (i, 0)),
        ),
        compiler_params=pltpu.CompilerParams(
            dimension_semantics=("parallel",),  # shard batch grid over v7x's 2 TCs
            vmem_limit_bytes=vmem_limit,
        ),
        cost_estimate=pl.CostEstimate(
            flops=flops, transcendentals=0, bytes_accessed=bytes_accessed),
    )(xp, w1c, b1c, w2c, b2c, w3c, b3c)

    # Row slice only (no padded columns to drop); no-op when B divides evenly.
    return out_p if B_p == B else out_p[:B]


def init_linear(key, fan_in, fan_out):
    """PyTorch nn.Linear-style init (uniform +/- 1/sqrt(fan_in)); weight returned
    already transposed to [in, out], bias as [1, out]."""
    kw, kb = jax.random.split(key)
    bound = 1.0 / jnp.sqrt(jnp.asarray(fan_in, jnp.float32))
    w = jax.random.uniform(kw, (fan_in, fan_out), jnp.float32, -bound, bound)
    b = jax.random.uniform(kb, (1, fan_out), jnp.float32, -bound, bound)
    return w, b


if __name__ == "__main__":
    num_feature = 32
    output_size = 16
    batch = 32

    key = jax.random.PRNGKey(0)
    kx, k1, k2, k3 = jax.random.split(key, 4)

    x = jax.random.normal(kx, (batch, num_feature), jnp.float32)
    w1, b1 = init_linear(k1, num_feature, H1)
    w2, b2 = init_linear(k2, H1, H2)
    w3, b3 = init_linear(k3, H2, output_size)

    try:
        out = jax.block_until_ready(light_mlp4(x, w1, b1, w2, b2, w3, b3))
    except Exception:
        # Fallback for jax versions where single-buffered (pl.Buffered(1)) weight specs
        # are not supported: same kernel with default double buffering.
        out = jax.block_until_ready(
            light_mlp4(x, w1, b1, w2, b2, w3, b3, single_buffer_weights=False))
    assert out.shape == (batch, output_size)

    # Reference 1: identical bf16-operand / f32-accumulation pipeline (apples-to-apples).
    bf16 = jnp.bfloat16
    r = jnp.dot(x.astype(bf16), w1.astype(bf16),
                preferred_element_type=jnp.float32) + b1
    r = jnp.maximum(r, 0.0)
    r = jnp.dot(r.astype(bf16), w2.astype(bf16),
                preferred_element_type=jnp.float32) + b2
    r = jnp.maximum(r, 0.0)
    r = jnp.dot(r.astype(bf16), w3.astype(bf16),
                preferred_element_type=jnp.float32) + b3
    assert jnp.allclose(out, r, atol=2e-3, rtol=2e-3)

    # Reference 2: full f32 (eval-mode dropout = identity); loose tol for the bf16 MXU path.
    ref = jnp.maximum(x @ w1 + b1, 0.0)
    ref = jnp.maximum(ref @ w2 + b2, 0.0)
    ref = ref @ w3 + b3
    assert jnp.allclose(out, ref, atol=5e-2, rtol=5e-2)

    print("KERNEL_OK")
</pallas_src>

<mosaic_0001>
module attributes {stable_mosaic.version = 11 : i64} {
  func.func @_mlp_kernel(%arg0: i32, %arg1: memref<32x32xf32, #tpu.memory_space<vmem>>, %arg2: memref<32x600xbf16, #tpu.memory_space<vmem>>, %arg3: memref<1x600xf32, #tpu.memory_space<vmem>>, %arg4: memref<600x100xbf16, #tpu.memory_space<vmem>>, %arg5: memref<1x100xf32, #tpu.memory_space<vmem>>, %arg6: memref<100x16xbf16, #tpu.memory_space<vmem>>, %arg7: memref<1x16xf32, #tpu.memory_space<vmem>>, %arg8: memref<32x16xf32, #tpu.memory_space<vmem>>) attributes {dimension_semantics = [#tpu.dimension_semantics<parallel>], iteration_bounds = array<i64: 1>, scalar_prefetch = 0 : i64, scratch_operands = 0 : i64, tpu.core_type = #tpu.core_type<tc>, window_params = [{transform_indices = @transform_0, window_bounds = array<i64: 32, 32>}, {pipeline_mode = #tpu.pipeline_mode<synchronous>, transform_indices = @transform_1, window_bounds = array<i64: 32, 600>}, {pipeline_mode = #tpu.pipeline_mode<synchronous>, transform_indices = @transform_2, window_bounds = array<i64: 1, 600>}, {pipeline_mode = #tpu.pipeline_mode<synchronous>, transform_indices = @transform_3, window_bounds = array<i64: 600, 100>}, {pipeline_mode = #tpu.pipeline_mode<synchronous>, transform_indices = @transform_4, window_bounds = array<i64: 1, 100>}, {pipeline_mode = #tpu.pipeline_mode<synchronous>, transform_indices = @transform_5, window_bounds = array<i64: 100, 16>}, {pipeline_mode = #tpu.pipeline_mode<synchronous>, transform_indices = @transform_6, window_bounds = array<i64: 1, 16>}, {transform_indices = @transform_7, window_bounds = array<i64: 32, 16>}]} {
    %c0 = arith.constant 0 : index
    %c0_0 = arith.constant 0 : index
    %0 = vector.load %arg1[%c0, %c0_0] : memref<32x32xf32, #tpu.memory_space<vmem>>, vector<32x32xf32>
    %1 = arith.truncf %0 : vector<32x32xf32> to vector<32x32xbf16>
    %c0_1 = arith.constant 0 : index
    %c0_2 = arith.constant 0 : index
    %2 = vector.load %arg2[%c0_1, %c0_2] : memref<32x600xbf16, #tpu.memory_space<vmem>>, vector<32x600xbf16>
    %cst = arith.constant dense<0.000000e+00> : vector<32x600xf32>
    %3 = tpu.matmul %1, %2, %cst {dimension_numbers = #tpu.dot_dimension_numbers<[1], [0], [0], [1], [0, 0, 1, 1], [], []>} : vector<32x32xbf16>, vector<32x600xbf16>, vector<32x600xf32> -> vector<32x600xf32>
    %c0_3 = arith.constant 0 : index
    %c0_4 = arith.constant 0 : index
    %4 = vector.load %arg3[%c0_3, %c0_4] : memref<1x600xf32, #tpu.memory_space<vmem>>, vector<1x600xf32>
    %5 = vector.broadcast %4 : vector<1x600xf32> to vector<32x600xf32>
    %6 = arith.addf %3, %5 : vector<32x600xf32>
    %cst_5 = arith.constant 0.000000e+00 : f32
    %7 = vector.broadcast %cst_5 : f32 to vector<32x600xf32>
    %8 = arith.maximumf %6, %7 : vector<32x600xf32>
    %9 = arith.truncf %8 : vector<32x600xf32> to vector<32x600xbf16>
    %c0_6 = arith.constant 0 : index
    %c0_7 = arith.constant 0 : index
    %10 = vector.load %arg4[%c0_6, %c0_7] : memref<600x100xbf16, #tpu.memory_space<vmem>>, vector<600x100xbf16>
    %cst_8 = arith.constant dense<0.000000e+00> : vector<32x100xf32>
    %11 = tpu.matmul %9, %10, %cst_8 {dimension_numbers = #tpu.dot_dimension_numbers<[1], [0], [0], [1], [0, 0, 1, 1], [], []>} : vector<32x600xbf16>, vector<600x100xbf16>, vector<32x100xf32> -> vector<32x100xf32>
    %c0_9 = arith.constant 0 : index
    %c0_10 = arith.constant 0 : index
    %12 = vector.load %arg5[%c0_9, %c0_10] : memref<1x100xf32, #tpu.memory_space<vmem>>, vector<1x100xf32>
    %13 = vector.broadcast %12 : vector<1x100xf32> to vector<32x100xf32>
    %14 = arith.addf %11, %13 : vector<32x100xf32>
    %cst_11 = arith.constant 0.000000e+00 : f32
    %15 = vector.broadcast %cst_11 : f32 to vector<32x100xf32>
    %16 = arith.maximumf %14, %15 : vector<32x100xf32>
    %17 = arith.truncf %16 : vector<32x100xf32> to vector<32x100xbf16>
    %c0_12 = arith.constant 0 : index
    %c0_13 = arith.constant 0 : index
    %18 = vector.load %arg6[%c0_12, %c0_13] : memref<100x16xbf16, #tpu.memory_space<vmem>>, vector<100x16xbf16>
    %cst_14 = arith.constant dense<0.000000e+00> : vector<32x16xf32>
    %19 = tpu.matmul %17, %18, %cst_14 {dimension_numbers = #tpu.dot_dimension_numbers<[1], [0], [0], [1], [0, 0, 1, 1], [], []>} : vector<32x100xbf16>, vector<100x16xbf16>, vector<32x16xf32> -> vector<32x16xf32>
    %c0_15 = arith.constant 0 : index
    %c0_16 = arith.constant 0 : index
    %20 = vector.load %arg7[%c0_15, %c0_16] : memref<1x16xf32, #tpu.memory_space<vmem>>, vector<1x16xf32>
    %21 = vector.broadcast %20 : vector<1x16xf32> to vector<32x16xf32>
    %22 = arith.addf %19, %21 : vector<32x16xf32>
    %c0_17 = arith.constant 0 : index
    %c0_18 = arith.constant 0 : index
    %23 = vector.load %arg8[%c0_17, %c0_18] : memref<32x16xf32, #tpu.memory_space<vmem>>, vector<32x16xf32>
    tpu.vector_store %arg8[%c0_17, %c0_18], %22 {strides = array<i32>} : memref<32x16xf32, #tpu.memory_space<vmem>>, vector<32x16xf32>,
    return
  }
  func.func @transform_0(%arg0: i32) -> (i32, i32) {
    %c0_i32 = arith.constant 0 : i32
    %c0_i32_0 = arith.constant 0 : i32
    return %arg0, %c0_i32 : i32, i32
  }
  func.func @transform_1(%arg0: i32) -> (i32, i32) {
    %c0_i32 = arith.constant 0 : i32
    %c0_i32_0 = arith.constant 0 : i32
    %c0_i32_1 = arith.constant 0 : i32
    return %c0_i32, %c0_i32_0 : i32, i32
  }
  func.func @transform_2(%arg0: i32) -> (i32, i32) {
    %c0_i32 = arith.constant 0 : i32
    %c0_i32_0 = arith.constant 0 : i32
    %c0_i32_1 = arith.constant 0 : i32
    return %c0_i32, %c0_i32_0 : i32, i32
  }
  func.func @transform_3(%arg0: i32) -> (i32, i32) {
    %c0_i32 = arith.constant 0 : i32
    %c0_i32_0 = arith.constant 0 : i32
    %c0_i32_1 = arith.constant 0 : i32
    return %c0_i32, %c0_i32_0 : i32, i32
  }
  func.func @transform_4(%arg0: i32) -> (i32, i32) {
    %c0_i32 = arith.constant 0 : i32
    %c0_i32_0 = arith.constant 0 : i32
    %c0_i32_1 = arith.constant 0 : i32
    return %c0_i32, %c0_i32_0 : i32, i32
  }
  func.func @transform_5(%arg0: i32) -> (i32, i32) {
    %c0_i32 = arith.constant 0 : i32
    %c0_i32_0 = arith.constant 0 : i32
    %c0_i32_1 = arith.constant 0 : i32
    return %c0_i32, %c0_i32_0 : i32, i32
  }
  func.func @transform_6(%arg0: i32) -> (i32, i32) {
    %c0_i32 = arith.constant 0 : i32
    %c0_i32_0 = arith.constant 0 : i32
    %c0_i32_1 = arith.constant 0 : i32
    return %c0_i32, %c0_i32_0 : i32, i32
  }
  func.func @transform_7(%arg0: i32) -> (i32, i32) {
    %c0_i32 = arith.constant 0 : i32
    %c0_i32_0 = arith.constant 0 : i32
    return %arg0, %c0_i32 : i32, i32
  }
}

module attributes {stable_mosaic.version = 11 : i64} {
  func.func @_mlp_kernel(%arg0: i32, %arg1: memref<32x32xf32, #tpu.memory_space<vmem>>, %arg2: memref<32x600xbf16, #tpu.memory_space<vmem>>, %arg3: memref<1x600xf32, #tpu.memory_space<vmem>>, %arg4: memref<600x100xbf16, #tpu.memory_space<vmem>>, %arg5: memref<1x100xf32, #tpu.memory_space<vmem>>, %arg6: memref<100x16xbf16, #tpu.memory_space<vmem>>, %arg7: memref<1x16xf32, #tpu.memory_space<vmem>>, %arg8: memref<32x16xf32, #tpu.memory_space<vmem>>) attributes {dimension_semantics = [#tpu.dimension_semantics<parallel>], iteration_bounds = array<i64: 1>, scalar_prefetch = 0 : i64, scratch_operands = 0 : i64, tpu.core_type = #tpu.core_type<tc>, window_params = [{transform_indices = @transform_0, window_bounds = array<i64: 32, 32>}, {pipeline_mode = #tpu.pipeline_mode<synchronous>, transform_indices = @transform_1, window_bounds = array<i64: 32, 600>}, {pipeline_mode = #tpu.pipeline_mode<synchronous>, transform_indices = @transform_2, window_bounds = array<i64: 1, 600>}, {pipeline_mode = #tpu.pipeline_mode<synchronous>, transform_indices = @transform_3, window_bounds = array<i64: 600, 100>}, {pipeline_mode = #tpu.pipeline_mode<synchronous>, transform_indices = @transform_4, window_bounds = array<i64: 1, 100>}, {pipeline_mode = #tpu.pipeline_mode<synchronous>, transform_indices = @transform_5, window_bounds = array<i64: 100, 16>}, {pipeline_mode = #tpu.pipeline_mode<synchronous>, transform_indices = @transform_6, window_bounds = array<i64: 1, 16>}, {transform_indices = @transform_7, window_bounds = array<i64: 32, 16>}]} {
    %c0 = arith.constant 0 : index
    %c0_0 = arith.constant 0 : index
    %0 = vector.load %arg1[%c0, %c0_0] : memref<32x32xf32, #tpu.memory_space<vmem>>, vector<32x32xf32>
    %1 = arith.truncf %0 : vector<32x32xf32> to vector<32x32xbf16>
    %c0_1 = arith.constant 0 : index
    %c0_2 = arith.constant 0 : index
    %2 = vector.load %arg2[%c0_1, %c0_2] : memref<32x600xbf16, #tpu.memory_space<vmem>>, vector<32x600xbf16>
    %cst = arith.constant dense<0.000000e+00> : vector<32x600xf32>
    %3 = tpu.matmul %1, %2, %cst {dimension_numbers = #tpu.dot_dimension_numbers<[1], [0], [0], [1], [0, 0, 1, 1], [], []>} : vector<32x32xbf16>, vector<32x600xbf16>, vector<32x600xf32> -> vector<32x600xf32>
    %c0_3 = arith.constant 0 : index
    %c0_4 = arith.constant 0 : index
    %4 = vector.load %arg3[%c0_3, %c0_4] : memref<1x600xf32, #tpu.memory_space<vmem>>, vector<1x600xf32>
    %5 = vector.broadcast %4 : vector<1x600xf32> to vector<32x600xf32>
    %6 = arith.addf %3, %5 : vector<32x600xf32>
    %cst_5 = arith.constant 0.000000e+00 : f32
    %7 = vector.broadcast %cst_5 : f32 to vector<32x600xf32>
    %8 = arith.maximumf %6, %7 : vector<32x600xf32>
    %9 = arith.truncf %8 : vector<32x600xf32> to vector<32x600xbf16>
    %c0_6 = arith.constant 0 : index
    %c0_7 = arith.constant 0 : index
    %10 = vector.load %arg4[%c0_6, %c0_7] : memref<600x100xbf16, #tpu.memory_space<vmem>>, vector<600x100xbf16>
    %cst_8 = arith.constant dense<0.000000e+00> : vector<32x100xf32>
    %11 = tpu.matmul %9, %10, %cst_8 {dimension_numbers = #tpu.dot_dimension_numbers<[1], [0], [0], [1], [0, 0, 1, 1], [], []>} : vector<32x600xbf16>, vector<600x100xbf16>, vector<32x100xf32> -> vector<32x100xf32>
    %c0_9 = arith.constant 0 : index
    %c0_10 = arith.constant 0 : index
    %12 = vector.load %arg5[%c0_9, %c0_10] : memref<1x100xf32, #tpu.memory_space<vmem>>, vector<1x100xf32>
    %13 = vector.broadcast %12 : vector<1x100xf32> to vector<32x100xf32>
    %14 = arith.addf %11, %13 : vector<32x100xf32>
    %cst_11 = arith.constant 0.000000e+00 : f32
    %15 = vector.broadcast %cst_11 : f32 to vector<32x100xf32>
    %16 = arith.maximumf %14, %15 : vector<32x100xf32>
    %17 = arith.truncf %16 : vector<32x100xf32> to vector<32x100xbf16>
    %c0_12 = arith.constant 0 : index
    %c0_13 = arith.constant 0 : index
    %18 = vector.load %arg6[%c0_12, %c0_13] : memref<100x16xbf16, #tpu.memory_space<vmem>>, vector<100x16xbf16>
    %cst_14 = arith.constant dense<0.000000e+00> : vector<32x16xf32>
    %19 = tpu.matmul %17, %18, %cst_14 {dimension_numbers = #tpu.dot_dimension_numbers<[1], [0], [0], [1], [0, 0, 1, 1], [], []>} : vector<32x100xbf16>, vector<100x16xbf16>, vector<32x16xf32> -> vector<32x16xf32>
    %c0_15 = arith.constant 0 : index
    %c0_16 = arith.constant 0 : index
    %20 = vector.load %arg7[%c0_15, %c0_16] : memref<1x16xf32, #tpu.memory_space<vmem>>, vector<1x16xf32>
    %21 = vector.broadcast %20 : vector<1x16xf32> to vector<32x16xf32>
    %22 = arith.addf %19, %21 : vector<32x16xf32>
    %c0_17 = arith.constant 0 : index
    %c0_18 = arith.constant 0 : index
    %23 = vector.load %arg8[%c0_17, %c0_18] : memref<32x16xf32, #tpu.memory_space<vmem>>, vector<32x16xf32>
    tpu.vector_store %arg8[%c0_17, %c0_18], %22 {strides = array<i32>} : memref<32x16xf32, #tpu.memory_space<vmem>>, vector<32x16xf32>,
    return
  }
  func.func @transform_0(%arg0: i32) -> (i32, i32) {
    %c0_i32 = arith.constant 0 : i32
    %c0_i32_0 = arith.constant 0 : i32
    return %arg0, %c0_i32 : i32, i32
  }
  func.func @transform_1(%arg0: i32) -> (i32, i32) {
    %c0_i32 = arith.constant 0 : i32
    %c0_i32_0 = arith.constant 0 : i32
    %c0_i32_1 = arith.constant 0 : i32
    return %c0_i32, %c0_i32_0 : i32, i32
  }
  func.func @transform_2(%arg0: i32) -> (i32, i32) {
    %c0_i32 = arith.constant 0 : i32
    %c0_i32_0 = arith.constant 0 : i32
    %c0_i32_1 = arith.constant 0 : i32
    return %c0_i32, %c0_i32_0 : i32, i32
  }
  func.func @transform_3(%arg0: i32) -> (i32, i32) {
    %c0_i32 = arith.constant 0 : i32
    %c0_i32_0 = arith.constant 0 : i32
    %c0_i32_1 = arith.constant 0 : i32
    return %c0_i32, %c0_i32_0 : i32, i32
  }
  func.func @transform_4(%arg0: i32) -> (i32, i32) {
    %c0_i32 = arith.constant 0 : i32
    %c0_i32_0 = arith.constant 0 : i32
    %c0_i32_1 = arith.constant 0 : i32
    return %c0_i32, %c0_i32_0 : i32, i32
  }
  func.func @transform_5(%arg0: i32) -> (i32, i32) {
    %c0_i32 = arith.constant 0 : i32
    %c0_i32_0 = arith.constant 0 : i32
    %c0_i32_1 = arith.constant 0 : i32
    return %c0_i32, %c0_i32_0 : i32, i32
  }
  func.func @transform_6(%arg0: i32) -> (i32, i32) {
    %c0_i32 = arith.constant 0 : i32
    %c0_i32_0 = arith.constant 0 : i32
    %c0_i32_1 = arith.constant 0 : i32
    return %c0_i32, %c0_i32_0 : i32, i32
  }
  func.func @transform_7(%arg0: i32) -> (i32, i32) {
    %c0_i32 = arith.constant 0 : i32
    %c0_i32_0 = arith.constant 0 : i32
    return %arg0, %c0_i32 : i32, i32
  }
}

</mosaic_0001>

<bundles_post_ra>
// kernel: light_mlp4.1
= control target key start
LH: loop header
LB: loop body
LE: loop exit
PB: predicated region body
PF: predicated region fallthrough
CT: control target
= control target key end

     0   :  { %v1167_v1 = vmov 0   ;;  %vm124_vm0 = vcmask 261120   ;;  %v47_v50 = vlaneseq  ;;  %vm623_vm1 = vcmask 719872   ;;  %s1418_s1 = inlined_call_operand.vmem [shape: bf16[32,600], index: 1, kind: input, shape index: {}]   ;;  %s1419_s0 = inlined_call_operand.vmem [shape: f32[32,32], index: 0, kind: input, shape index: {}]   ;;  %s1420_s3 = inlined_call_operand.vmem [shape: bf16[600,100], index: 3, kind: input, shape index: {}]   ;;  %s1421_s2 = inlined_call_operand.vmem [shape: f32[1,600], index: 2, kind: input, shape index: {}]   ;;  %s1422_s5 = inlined_call_operand.vmem [shape: bf16[100,16], index: 5, kind: input, shape index: {}]   ;;  %s1423_s4 = inlined_call_operand.vmem [shape: f32[1,100], index: 4, kind: input, shape index: {}]   ;;  %s1424_s6 = inlined_call_operand.vmem [shape: f32[1,16], index: 6, kind: input, shape index: {}]   ;;  %s1425_s7 = inlined_call_operand.vmem [shape: f32[32,16], index: 7, kind: output, shape index: {}]  }
   0x1   :  { %v1108_v0 = vld [vmem:[%s1418_s1 + $0x4] ss:$20 sps:$4 sm:$0xff]   ;;  %163 = vmatprep.mubr.bf16.mxu0 %v1167_v1  ;;  %173 = vmatprep.mubr.bf16.mxu1 %v1167_v1  ;;  %v1110_v2 = vld [vmem:[%s1418_s1] ss:$20 sps:$4 sm:$0xff]   ;;  %v1113_v4 = vld [vmem:[%s1418_s1 + $0x28] ss:$20 sps:$4 sm:$0xff]  }
   0x2   :  { %131 = vmatprep.subr.bf16.mxu0 %v1108_v0  ;;  %1101 = vmatprep.subr.bf16.mxu1 %v1108_v0  ;;  %v1111_v3 = vld [vmem:[%s1418_s1 + $0x2c] ss:$20 sps:$4 sm:$0xff]   ;;  %v29_v7 = vld [vmem:[%s1419_s0 + $0x10] sm:$0xff]  ;;  %v30_v8 = vld [vmem:[%s1419_s0 + $0x18] sm:$0xff]  ;;  %v48_v51 = vshrl.u32 %v47_v50, 7  ;;  %vm630_vm2 = vcmask 1043456  }
   0x3   :  { %v27_v5 = vld [vmem:[%s1419_s0] sm:$0xff]  ;;  %132 = vmatpush1.bf16.msra.mxu0 %v1110_v2  ;;  %1103 = vmatpush1.bf16.msra.mxu1 %v1110_v2  ;;  %v28_v6 = vld [vmem:[%s1419_s0 + $0x8] sm:$0xff]  ;;  %v32_v11 = vpack.c.bf16 %v30_v8, %v29_v7  ;;  %v1126_v25 = vld [vmem:[%s1420_s3 + $0x50] sm:$0xff]   ;;  %vm853_vm3 = vcmask 1041408   ;;  %vm846_vm4 = vcmask 818176   ;;  %vm906_vm5 = vcmask 130048  }
   0x4   :  { %133 = vmatprep.subr.bf16.mxu0 %v1111_v3  ;;  %1102 = vmatprep.subr.bf16.mxu1 %v1111_v3  ;;  %v1116_v9 = vld [vmem:[%s1418_s1 + $0xc] ss:$20 sps:$4 sm:$0xff]   ;;  %v31_v10 = vpack.c.bf16 %v28_v6, %v27_v5  ;;  %v1114_v12 = vld [vmem:[%s1418_s1 + $0x8] ss:$20 sps:$4 sm:$0xff]   ;;  %v1120_v13 = vld [vmem:[%s1418_s1 + $0x10] ss:$20 sps:$4 sm:$0xff]  }
   0x5   :  { %v1119_v14 = vld [vmem:[%s1418_s1 + $0x34] ss:$20 sps:$4 sm:$0xff]   ;;  %v1121_v15 = vld [vmem:[%s1418_s1 + $0x38] ss:$20 sps:$4 sm:$0xff]   ;;  %v1117_v16 = vld [vmem:[%s1418_s1 + $0x30] ss:$20 sps:$4 sm:$0xff]  }
   0x6   :  { %v1122_v17 = vld [vmem:[%s1420_s3 + $0x40] sm:$0xff]   ;;  %v1124_v21 = vld [vmem:[%s1420_s3 + $0x48] sm:$0xff]   ;;  %v1127_v26 = vld [vmem:[%s1420_s3 + $0x10] sm:$0xff]   ;;  %v49_v52 = vsub.s32 0, %v48_v51  ;;  %v53_v54 = vsub.s32 1, %v48_v51  ;;  %v57_v59 = vsub.s32 2, %v48_v51 }
   0x7   :  { %134 = vmatpush1.bf16.msra.mxu0 %v1113_v4  ;;  %1104 = vmatpush1.bf16.msra.mxu1 %v1113_v4  ;;  %v1123_v18 = vld [vmem:[%s1420_s3] sm:$0xff]   ;;  %v1125_v22 = vld [vmem:[%s1420_s3 + $0x8] sm:$0xff]   ;;  %v1136_v27 = vld [vmem:[%s1420_s3 + $0xd0] sm:$0xff]   ;;  %v61_v0 = vsub.s32 3, %v48_v51  ;;  %v65_v5 = vsub.s32 4, %v48_v51 }
   0x8   :  { %184 = vmatprep.subr.bf16.mxu1 %v1116_v9  ;;  %1059 = vmatprep.subr.bf16.mxu0 %v1120_v13  ;;  %v1128_v19 = vld [vmem:[%s1420_s3 + $0xc0] sm:$0xff]   ;;  %v1132_v23 = vld [vmem:[%s1420_s3 + $0xc8] sm:$0xff]   ;;  %v1137_v28 = vld [vmem:[%s1420_s3 + $0x90] sm:$0xff]  }
   0x9   :  { %v1129_v20 = vld [vmem:[%s1420_s3 + $0x80] sm:$0xff]   ;;  %v1133_v24 = vld [vmem:[%s1420_s3 + $0x88] sm:$0xff]   ;;  %v1130_v29 = vld [vmem:[%s1420_s3 + $0x58] sm:$0xff]  }
   0xa   :  { %925 = vmatmul.mubr.msk.bf16.vlgmr.msra.gmra.mrb[0].mxu0 %vm124_vm0, %v31_v10  ;;  %926 = vmatmul.mubr.msk.bf16.vlgmr.msra.gmra.mrb[0].mxu1 %vm124_vm0, %v32_v11  ;;  %v1131_v30 = vld [vmem:[%s1420_s3 + $0x18] sm:$0xff]   ;;  %v1134_v31 = vld [vmem:[%s1420_s3 + $0x60] sm:$0xff]   ;;  %v1138_v34 = vld [vmem:[%s1420_s3 + $0x68] sm:$0xff]  }
   0xb   :  { %185 = vmatpush1.bf16.msra.mxu1 %v1114_v12  ;;  %216 = vmatprep.mubr.bf16.mxu1 %v1167_v1  ;;  %v1140_v32 = vld [vmem:[%s1420_s3 + $0xd8] sm:$0xff]   ;;  %v1135_v33 = vld [vmem:[%s1420_s3 + $0x20] sm:$0xff]   ;;  %v1139_v35 = vld [vmem:[%s1420_s3 + $0x28] sm:$0xff]  }
   0xc   :  { %186 = vmatprep.subr.bf16.mxu1 %v1119_v14  ;;  %1060 = vmatpush3.bf16.msra.mxu0 %v1120_v13  ;;  %v1141_v36 = vld [vmem:[%s1420_s3 + $0x98] sm:$0xff]   ;;  %v1142_v37 = vld [vmem:[%s1420_s3 + $0x70] sm:$0xff]   ;;  %v1144_v39 = vld [vmem:[%s1420_s3 + $0xe0] sm:$0xff]  }
   0xd   :  { %1061 = vmatprep.subr.bf16.mxu0 %v1121_v15  ;;  %1063 = vmatprep.mubr.msk.bf16.mxu0 %vm124_vm0, %v31_v10  ;;  %v1143_v38 = vld [vmem:[%s1420_s3 + $0x30] sm:$0xff]   ;;  %v1145_v40 = vld [vmem:[%s1420_s3 + $0xa0] sm:$0xff]   ;;  %v1146_v41 = vld [vmem:[%s1420_s3 + $0x78] sm:$0xff]  }
   0xe   :  { %v1147_v42 = vld [vmem:[%s1420_s3 + $0x38] sm:$0xff]   ;;  %v1148_v43 = vld [vmem:[%s1420_s3 + $0xe8] sm:$0xff]   ;;  %v1343_v45 = vld [vmem:[%s1420_s3 + $0x100] sm:$0xff]  }
   0xf   :  { %187 = vmatpush1.bf16.msra.mxu1 %v1117_v16  ;;  %v1149_v44 = vld [vmem:[%s1420_s3 + $0xa8] sm:$0xff]   ;;  %v1151_v46 = vld [vmem:[%s1420_s3 + $0xf0] sm:$0xff]   ;;  %v1154_v48 = vld [vmem:[%s1420_s3 + $0xf8] sm:$0xff]  }
  0x10   :  { %1062 = vmatpush3.bf16.msra.mxu0 %v1121_v15  ;;  %986 = vmatprep.subr.bf16.mxu1 %v1122_v17  ;;  %v1152_v47 = vld [vmem:[%s1420_s3 + $0xb0] sm:$0xff]   ;;  %v1155_v49 = vld [vmem:[%s1420_s3 + $0xb8] sm:$0xff]   ;;  %v45_v53 = vld [vmem:[%s1421_s2] sm:$0x1f] }
  0x11   :  { %1014 = vmatprep.subr.bf16.mxu0 %v1128_v19  ;;  %v50_v55 = vrot.slane %v45_v53, %v49_v52  ;;  %v54_v56 = vrot.slane %v45_v53, %v53_v54  ;;  %v58_v14 = vrot.slane %v45_v53, %v57_v59  ;;  %v1157_v59 = vld [vmem:[%s1420_s3 + $0x118] sm:$0xff]  }
  0x12   :  { %927 = vmatmul.mubr.msk.bf16.vlgmr.msra.gmra.mrb[4].mxu1 %vm124_vm0, %v31_v10 }
  0x13   :  { %226 = vmatprep.mubr.bf16.mxu1 %v1167_v1  ;;  %1064 = vmatmul.mubr.msk.bf16.vlgmr.msra.gmra.mrb[4].mxu0 %vm124_vm0, %v32_v11 }
  0x14   :  { %987 = vmatpush3.bf16.msra.mxu1 %v1123_v18  ;;  %1015 = vmatpush3.bf16.msra.mxu0 %v1129_v20  ;;  %v62_v18 = vrot.slane %v45_v53, %v61_v0 }
  0x15   :  { %988 = vmatprep.subr.bf16.mxu1 %v1124_v21  ;;  %1016 = vmatprep.subr.bf16.mxu0 %v1132_v23 }
  0x18   :  { %989 = vmatpush3.bf16.msra.mxu1 %v1125_v22  ;;  %1017 = vmatpush3.bf16.msra.mxu0 %v1133_v24  ;;  %v66_v22 = vrot.slane %v45_v53, %v65_v5  ;;  %v1158_v5 = vld [vmem:[%s1420_s3 + $0x120] sm:$0xff]  }
  0x19   :  { %990 = vmatprep.subr.bf16.mxu1 %v1126_v25  ;;  %1018 = vmatprep.subr.bf16.mxu0 %v1136_v27 }
  0x1a   :  { %928 = vmatmul.mubr.msk.bf16.gmra.mrb[8].mxu1 %vm124_vm0, %v32_v11 }
  0x1c   :  { %991 = vmatpush3.bf16.msra.mxu1 %v1127_v26  ;;  %1019 = vmatpush3.bf16.msra.mxu0 %v1137_v28 }
  0x1d   :  { %992 = vmatprep.subr.bf16.mxu1 %v1130_v29  ;;  %1020 = vmatprep.subr.bf16.mxu0 %v1140_v32 }
  0x20   :  { %993 = vmatpush3.bf16.msra.mxu1 %v1131_v30  ;;  %1021 = vmatpush3.bf16.msra.mxu0 %v1141_v36  ;;  %v1153_v30 = vld [vmem:[%s1420_s3 + $0x108] sm:$0xff]  }
  0x21   :  { %994 = vmatprep.subr.bf16.mxu1 %v1134_v31  ;;  %1022 = vmatprep.subr.bf16.mxu0 %v1144_v39 }
  0x24   :  { %995 = vmatpush3.bf16.msra.mxu1 %v1135_v33  ;;  %1023 = vmatpush3.bf16.msra.mxu0 %v1145_v40 }
  0x25   :  { %996 = vmatprep.subr.bf16.mxu1 %v1138_v34  ;;  %1024 = vmatprep.subr.bf16.mxu0 %v1148_v43 }
  0x28   :  { %997 = vmatpush3.bf16.msra.mxu1 %v1139_v35  ;;  %1025 = vmatpush3.bf16.msra.mxu0 %v1149_v44 }
  0x29   :  { %998 = vmatprep.subr.bf16.mxu1 %v1142_v37  ;;  %1026 = vmatprep.subr.bf16.mxu0 %v1151_v46 }
  0x2c   :  { %999 = vmatpush3.bf16.msra.mxu1 %v1143_v38  ;;  %1027 = vmatpush3.bf16.msra.mxu0 %v1152_v47 }
  0x2d   :  { %1000 = vmatprep.subr.bf16.mxu1 %v1146_v41  ;;  %1028 = vmatprep.subr.bf16.mxu0 %v1154_v48  ;;  %v1156_v48 = vld [vmem:[%s1420_s3 + $0x110] sm:$0xff]  }
  0x30   :  { %1001 = vmatpush3.bf16.msra.mxu1 %v1147_v42  ;;  %1029 = vmatpush3.bf16.msra.mxu0 %v1155_v49 }
  0x31   :  { %1067 = vmatprep.subr.bf16.mxu1 %v1343_v45 }
  0xdd   :  { %v165_v57 = vpop.f32.mrb[0].mxu0  ;;  %v175_v58 = vpop.f32.mrb[0].mxu1 }
  0xde   :  { %v166_v60 = vadd.f32 %v165_v57, %v50_v55  ;;  %v167_v61 = vpop.f32.mrb[1].mxu0  ;;  %v176_v62 = vadd.f32 %v175_v58, %v50_v55  ;;  %v177_v63 = vpop.f32.mrb[1].mxu1 }
  0xdf   :  { %v168_v1 = vadd.f32 %v167_v61, %v54_v56  ;;  %v169_v2 = vpop.f32.mrb[2].mxu0  ;;  %v178_v3 = vadd.f32 %v177_v63, %v54_v56  ;;  %v179_v4 = vpop.f32.mrb[2].mxu1 }
  0xe0   :  { %v296_v6 = vmax.f32 %v176_v62, 0.0  ;;  %v170_v7 = vadd.f32 %v169_v2, %v50_v55  ;;  %v171_v8 = vpop.f32.mrb[3].mxu0  ;;  %v180_v9 = vadd.f32 %v179_v4, %v50_v55  ;;  %v181_v10 = vpop.f32.mrb[3].mxu1  ;;  %v286_v15 = vmax.f32 %v166_v60, 0.0 }
  0xe1   :  { %v297_v11 = vmax.f32 %v178_v3, 0.0  ;;  %v172_v12 = vadd.f32 %v171_v8, %v54_v56  ;;  %v182_v13 = vadd.f32 %v181_v10, %v54_v56  ;;  %v287_v19 = vmax.f32 %v168_v1, 0.0 }
  0xe2   :  { %v291_v16 = vmax.f32 %v170_v7, 0.0  ;;  %v301_v17 = vmax.f32 %v180_v9, 0.0  ;;  %v1159_v9 = vld [vmem:[%s1420_s3 + $0x128] ss:$0 sps:$4 sm:$0xff]  }
  0xe3   :  { %v292_v20 = vmax.f32 %v172_v12, 0.0  ;;  %v302_v21 = vmax.f32 %v182_v13, 0.0  ;;  %v632_v10 = vsel %vm630_vm2, %v1159_v9, 0  ;;  %v1161_v12 = vld [vmem:[%s1422_s5 + $0x8] sm:$0xff]   ;;  %v1162_v13 = vld [vmem:[%s1422_s5 + $0x10] sm:$0xff]  }
  0xe4   :  { %v306_v23 = vpack.c.bf16 %v291_v16, %v286_v15  ;;  %v311_v24 = vpack.c.bf16 %v301_v17, %v296_v6  ;;  %v1164_v15 = vld [vmem:[%s1422_s5 + $0x20] sm:$0xff]   ;;  %v1165_v16 = vld [vmem:[%s1422_s5 + $0x28] sm:$0xff]   ;;  %v1166_v17 = vld [vmem:[%s1422_s5 + $0x30] ss:$0 sps:$4 sm:$0x33]  }
  0xe5   :  { %v307_v25 = vpack.c.bf16 %v292_v20, %v287_v19  ;;  %v312_v26 = vpack.c.bf16 %v302_v21, %v297_v11  ;;  %v218_v27 = vpop.f32.mrb[4].mxu1  ;;  %v1160_v11 = vld [vmem:[%s1422_s5] sm:$0xff]  }
  0xe6   :  { %v219_v28 = vadd.f32 %v218_v27, %v58_v14  ;;  %v220_v29 = vpop.f32.mrb[5].mxu1  ;;  %v1065_v31 = vpop.f32.mrb[4].mxu0  ;;  %1083 = vmatprep.subr.bf16.mxu0 %v1160_v11 }
  0xe7   :  { %v221_v32 = vadd.f32 %v220_v29, %v62_v18  ;;  %v222_v33 = vpop.f32.mrb[6].mxu1  ;;  %666 = vmatprep.mubr.bf16.mxu1 %v307_v25  ;;  %v280_v34 = vadd.f32 %v1065_v31, %v66_v22  ;;  %v271_v35 = vpop.f32.mrb[5].mxu0  ;;  %v931_v25 = vld [vmem:[%s1423_s4] ss:$0 sm:$0xff] }
  0xe8   :  { %v288_v36 = vmax.f32 %v219_v28, 0.0  ;;  %v223_v37 = vadd.f32 %v222_v33, %v58_v14  ;;  %v224_v38 = vpop.f32.mrb[7].mxu1  ;;  %667 = vmatmul.mubr.bf16.vlgmr.msra.gmra.mrb[12].mxu1 %v306_v23  ;;  %v272_v39 = vadd.f32 %v271_v35, %v66_v22  ;;  %v1066_v40 = vpop.f32.mrb[6].mxu0 }
  0xe9   :  { %v289_v41 = vmax.f32 %v221_v32, 0.0  ;;  %v225_v42 = vadd.f32 %v224_v38, %v62_v18  ;;  %1068 = vmatpush3.bf16.msra.mxu1 %v1343_v45  ;;  %674 = vmatprep.mubr.bf16.mxu1 %v312_v26  ;;  %v300_v43 = vmax.f32 %v280_v34, 0.0  ;;  %v283_v44 = vadd.f32 %v1066_v40, %v66_v22  ;;  %v274_v46 = vpop.f32.mrb[7].mxu0 }
  0xea   :  { %v293_v47 = vmax.f32 %v223_v37, 0.0  ;;  %1069 = vmatprep.subr.bf16.mxu1 %v1153_v30  ;;  %v290_v49 = vmax.f32 %v272_v39, 0.0  ;;  %v275_v50 = vadd.f32 %v274_v46, %v66_v22 }
  0xeb   :  { %v294_v51 = vmax.f32 %v225_v42, 0.0  ;;  %v305_v52 = vmax.f32 %v283_v44, 0.0 }
  0xec   :  { %v308_v53 = vpack.c.bf16 %v293_v47, %v288_v36  ;;  %v295_v54 = vmax.f32 %v275_v50, 0.0 }
  0xed   :  { %v309_v55 = vpack.c.bf16 %v294_v51, %v289_v41  ;;  %1070 = vmatpush3.bf16.msra.mxu1 %v1153_v30  ;;  %v228_v56 = vpop.f32.mrb[8].mxu1  ;;  %v315_v45 = vpack.c.bf16 %v305_v52, %v300_v43 }
  0xee   :  { %v229_v57 = vadd.f32 %v228_v56, %v58_v14  ;;  %v230_v58 = vpop.f32.mrb[9].mxu1  ;;  %1071 = vmatprep.subr.bf16.mxu1 %v1156_v48  ;;  %v310_v60 = vpack.c.bf16 %v295_v54, %v290_v49 }
  0xef   :  { %v231_v61 = vadd.f32 %v230_v58, %v62_v18  ;;  %v232_v62 = vpop.f32.mrb[10].mxu1  ;;  %715 = vmatprep.mubr.bf16.mxu0 %v309_v55 }
  0xf0   :  { %v298_v63 = vmax.f32 %v229_v57, 0.0  ;;  %v233_v0 = vadd.f32 %v232_v62, %v58_v14  ;;  %v234_v1 = vpop.f32.mrb[11].mxu1  ;;  %675 = vmatmul.mubr.bf16.gmra.mrb[16].mxu1 %v311_v24  ;;  %716 = vmatmul.mubr.bf16.vlgmr.msra.gmra.mrb[8].mxu0 %v308_v53  ;;  %v1163_v14 = vld [vmem:[%s1422_s5 + $0x18] sm:$0xff]  }
  0xf1   :  { %v299_v2 = vmax.f32 %v231_v61, 0.0  ;;  %v235_v3 = vadd.f32 %v234_v1, %v62_v18  ;;  %1072 = vmatpush3.bf16.msra.mxu1 %v1156_v48  ;;  %1079 = vmatprep.mubr.msk.bf16.mxu1 %vm623_vm1, %v310_v60  ;;  %v855_v18 = vsel %vm853_vm3, %v1166_v17, 0 }
  0xf2   :  { %v303_v4 = vmax.f32 %v233_v0, 0.0  ;;  %1073 = vmatprep.subr.bf16.mxu1 %v1157_v59  ;;  %1084 = vmatpush3.bf16.msra.mxu0 %v1160_v11 }
  0xf3   :  { %v304_v6 = vmax.f32 %v235_v3, 0.0  ;;  %1085 = vmatprep.subr.bf16.mxu0 %v1161_v12 }
  0xf4   :  { %v313_v7 = vpack.c.bf16 %v303_v4, %v298_v63 }
  0xf5   :  { %v314_v8 = vpack.c.bf16 %v304_v6, %v299_v2  ;;  %1074 = vmatpush3.bf16.msra.mxu1 %v1157_v59  ;;  %v972_v2 = vld [vmem:[%s1424_s6] ss:$0 sm:$0xff] }
  0xf6   :  { %1075 = vmatprep.subr.bf16.mxu1 %v1158_v5  ;;  %1086 = vmatpush3.bf16.msra.mxu0 %v1161_v12 }
  0xf7   :  { %723 = vmatprep.mubr.bf16.mxu0 %v314_v8  ;;  %1087 = vmatprep.subr.bf16.mxu0 %v1162_v13 }
  0xf8   :  { %724 = vmatmul.mubr.bf16.gmra.mrb[12].mxu0 %v313_v7 }
  0xf9   :  { %1076 = vmatpush3.bf16.msra.mxu1 %v1158_v5 }
  0xfa   :  { %1105 = vmatprep.subr.msk.bf16.mxu1 %vm630_vm2, %v1159_v9  ;;  %1088 = vmatpush3.bf16.msra.mxu0 %v1162_v13 }
  0xfb   :  { %1089 = vmatprep.subr.bf16.mxu0 %v1163_v14 }
  0xfd   :  { %1078 = vmatpush3.bf16.msra.mxu1 %v632_v10 }
  0xfe   :  { %1090 = vmatpush3.bf16.msra.mxu0 %v1163_v14 }
  0xff   :  { %1091 = vmatprep.subr.bf16.mxu0 %v1164_v15 }
 0x100   :  { %1080 = vmatmul.mubr.msk.bf16.vlgmr.msra.gmra.mrb[20].mxu1 %vm623_vm1, %v315_v45 }
 0x102   :  { %1092 = vmatpush3.bf16.msra.mxu0 %v1164_v15 }
 0x103   :  { %1093 = vmatprep.subr.bf16.mxu0 %v1165_v16 }
 0x106   :  { %1094 = vmatpush3.bf16.msra.mxu0 %v1165_v16 }
 0x107   :  { %1106 = vmatprep.subr.msk.bf16.mxu0 %vm853_vm3, %v1166_v17 }
 0x10a   :  { %1096 = vmatpush3.bf16.msra.mxu0 %v855_v18 }
 0x1bb   :  { %v1002_v19 = vpop.f32.mrb[12].mxu1 }
 0x1bc   :  { %v1003_v20 = vpop.f32.mrb[13].mxu1 }
 0x1bd   :  { %v1004_v21 = vadd.f32 %v1003_v20, %v1002_v19  ;;  %v1005_v22 = vpop.f32.mrb[14].mxu1 }
 0x1be   :  { %v1006_v23 = vpop.f32.mrb[15].mxu1 }
 0x1bf   :  { %v1007_v24 = vadd.f32 %v1006_v23, %v1005_v22  ;;  %v669_v30 = vadd.f32 %v1004_v21, %v931_v25 }
 0x1c1   :  { %v672_v37 = vadd.f32 %v1007_v24, %v931_v25 }
 0x1c3   :  { %v1008_v26 = vpop.f32.mrb[16].mxu1  ;;  %v1030_v27 = vpop.f32.mrb[8].mxu0 }
 0x1c4   :  { %v1009_v28 = vpop.f32.mrb[17].mxu1  ;;  %v1031_v29 = vpop.f32.mrb[9].mxu0 }
 0x1c5   :  { %v1010_v31 = vadd.f32 %v1009_v28, %v1008_v26  ;;  %v1032_v32 = vadd.f32 %v1031_v29, %v1030_v27  ;;  %v1011_v33 = vpop.f32.mrb[18].mxu1  ;;  %v1033_v34 = vpop.f32.mrb[10].mxu0 }
 0x1c6   :  { %v1012_v35 = vpop.f32.mrb[19].mxu1  ;;  %v1034_v36 = vpop.f32.mrb[11].mxu0 }
 0x1c7   :  { %v1013_v38 = vadd.f32 %v1012_v35, %v1011_v33  ;;  %v1035_v39 = vadd.f32 %v1034_v36, %v1033_v34  ;;  %v718_v40 = vadd.f32 %v1032_v32, %v669_v30  ;;  %v677_v44 = vadd.f32 %v1010_v31, %v931_v25 }
 0x1c9   :  { %v721_v41 = vadd.f32 %v1035_v39, %v672_v37  ;;  %v680_v49 = vadd.f32 %v1013_v38, %v931_v25 }
 0x1cb   :  { %v1036_v42 = vpop.f32.mrb[12].mxu0 }
 0x1cc   :  { %v1037_v43 = vpop.f32.mrb[13].mxu0 }
 0x1cd   :  { %v1038_v46 = vadd.f32 %v1037_v43, %v1036_v42  ;;  %v1039_v47 = vpop.f32.mrb[14].mxu0 }
 0x1ce   :  { %v1040_v48 = vpop.f32.mrb[15].mxu0 }
 0x1cf   :  { %v1041_v50 = vadd.f32 %v1040_v48, %v1039_v47  ;;  %v726_v51 = vadd.f32 %v1038_v46, %v677_v44 }
 0x1d1   :  { %v729_v52 = vadd.f32 %v1041_v50, %v680_v49 }
 0x1d3   :  { %v1081_v53 = vpop.f32.mrb[20].mxu1 }
 0x1d4   :  { %v775_v54 = vadd.f32 %v1081_v53, %v726_v51  ;;  %v766_v55 = vpop.f32.mrb[21].mxu1 }
 0x1d5   :  { %v767_v56 = vadd.f32 %v766_v55, %v718_v40  ;;  %v1082_v45 = vpop.f32.mrb[22].mxu1 }
 0x1d6   :  { %v778_v57 = vadd.f32 %v1082_v45, %v729_v52  ;;  %v769_v58 = vpop.f32.mrb[23].mxu1  ;;  %v783_v60 = vmax.f32 %v775_v54, 0.0 }
 0x1d7   :  { %v770_v59 = vadd.f32 %v769_v58, %v721_v41  ;;  %v781_v62 = vmax.f32 %v767_v56, 0.0 }
 0x1d8   :  { %v784_v61 = vmax.f32 %v778_v57, 0.0 }
 0x1d9   :  { %v782_v63 = vmax.f32 %v770_v59, 0.0 }
 0x1da   :  { %v786_v0 = vpack.c.bf16 %v784_v61, %v783_v60 }
 0x1db   :  { %v785_v1 = vpack.c.bf16 %v782_v63, %v781_v62 }
 0x1dd   :  { %1097 = vmatprep.mubr.msk.bf16.mxu0 %vm846_vm4, %v785_v1 }
 0x1de   :  { %1098 = vmatmul.mubr.msk.bf16.vlgmr.msra.gmra.mrb[16].mxu0 %vm846_vm4, %v786_v0 }
 0x2b1   :  { %v1099_v3 = vpop.f32.mrb[16].mxu0 }
 0x2b2   :  { %v900_v4 = vadd.f32 %v1099_v3, %v972_v2  ;;  %v891_v5 = vpop.f32.mrb[17].mxu0 }
 0x2b3   :  { %v892_v6 = vadd.f32 %v972_v2, %v891_v5  ;;  %v1100_v7 = vpop.f32.mrb[18].mxu0 }
 0x2b4   :  { %909 = vst.msk [vmem:[%s1425_s7 + $0x10] sm:$0xff] %vm906_vm5, %v900_v4  ;;  %v903_v8 = vadd.f32 %v1100_v7, %v972_v2  ;;  %v894_v9 = vpop.f32.mrb[19].mxu0 }
 0x2b5   :  { %907 = vst.msk [vmem:[%s1425_s7] sm:$0xff] %vm906_vm5, %v892_v6  ;;  %v895_v10 = vadd.f32 %v972_v2, %v894_v9 }
 0x2b6   :  { %910 = vst.msk [vmem:[%s1425_s7 + $0x18] sm:$0xff] %vm906_vm5, %v903_v8 }
 0x2b7   :  { %908 = vst.msk [vmem:[%s1425_s7 + $0x8] sm:$0xff] %vm906_vm5, %v895_v10 }

// kernel: light_mlp4.1
= control target key start
LH: loop header
LB: loop body
LE: loop exit
PB: predicated region body
PF: predicated region fallthrough
CT: control target
= control target key end

     0   :  { %v1167_v1 = vmov 0   ;;  %vm124_vm0 = vcmask 261120   ;;  %v47_v50 = vlaneseq  ;;  %vm623_vm1 = vcmask 719872   ;;  %s1418_s1 = inlined_call_operand.vmem [shape: bf16[32,600], index: 1, kind: input, shape index: {}]   ;;  %s1419_s0 = inlined_call_operand.vmem [shape: f32[32,32], index: 0, kind: input, shape index: {}]   ;;  %s1420_s3 = inlined_call_operand.vmem [shape: bf16[600,100], index: 3, kind: input, shape index: {}]   ;;  %s1421_s2 = inlined_call_operand.vmem [shape: f32[1,600], index: 2, kind: input, shape index: {}]   ;;  %s1422_s5 = inlined_call_operand.vmem [shape: bf16[100,16], index: 5, kind: input, shape index: {}]   ;;  %s1423_s4 = inlined_call_operand.vmem [shape: f32[1,100], index: 4, kind: input, shape index: {}]   ;;  %s1424_s6 = inlined_call_operand.vmem [shape: f32[1,16], index: 6, kind: input, shape index: {}]   ;;  %s1425_s7 = inlined_call_operand.vmem [shape: f32[32,16], index: 7, kind: output, shape index: {}]  }
   0x1   :  { %v1108_v0 = vld [vmem:[%s1418_s1 + $0x4] ss:$20 sps:$4 sm:$0xff]   ;;  %163 = vmatprep.mubr.bf16.mxu0 %v1167_v1  ;;  %173 = vmatprep.mubr.bf16.mxu1 %v1167_v1  ;;  %v1110_v2 = vld [vmem:[%s1418_s1] ss:$20 sps:$4 sm:$0xff]   ;;  %v1113_v4 = vld [vmem:[%s1418_s1 + $0x28] ss:$20 sps:$4 sm:$0xff]  }
   0x2   :  { %131 = vmatprep.subr.bf16.mxu0 %v1108_v0  ;;  %1101 = vmatprep.subr.bf16.mxu1 %v1108_v0  ;;  %v1111_v3 = vld [vmem:[%s1418_s1 + $0x2c] ss:$20 sps:$4 sm:$0xff]   ;;  %v29_v7 = vld [vmem:[%s1419_s0 + $0x10] sm:$0xff]  ;;  %v30_v8 = vld [vmem:[%s1419_s0 + $0x18] sm:$0xff]  ;;  %v48_v51 = vshrl.u32 %v47_v50, 7  ;;  %vm630_vm2 = vcmask 1043456  }
   0x3   :  { %v27_v5 = vld [vmem:[%s1419_s0] sm:$0xff]  ;;  %132 = vmatpush1.bf16.msra.mxu0 %v1110_v2  ;;  %1103 = vmatpush1.bf16.msra.mxu1 %v1110_v2  ;;  %v28_v6 = vld [vmem:[%s1419_s0 + $0x8] sm:$0xff]  ;;  %v32_v11 = vpack.c.bf16 %v30_v8, %v29_v7  ;;  %v1126_v25 = vld [vmem:[%s1420_s3 + $0x50] sm:$0xff]   ;;  %vm853_vm3 = vcmask 1041408   ;;  %vm846_vm4 = vcmask 818176   ;;  %vm906_vm5 = vcmask 130048  }
   0x4   :  { %133 = vmatprep.subr.bf16.mxu0 %v1111_v3  ;;  %1102 = vmatprep.subr.bf16.mxu1 %v1111_v3  ;;  %v1116_v9 = vld [vmem:[%s1418_s1 + $0xc] ss:$20 sps:$4 sm:$0xff]   ;;  %v31_v10 = vpack.c.bf16 %v28_v6, %v27_v5  ;;  %v1114_v12 = vld [vmem:[%s1418_s1 + $0x8] ss:$20 sps:$4 sm:$0xff]   ;;  %v1120_v13 = vld [vmem:[%s1418_s1 + $0x10] ss:$20 sps:$4 sm:$0xff]  }
   0x5   :  { %v1119_v14 = vld [vmem:[%s1418_s1 + $0x34] ss:$20 sps:$4 sm:$0xff]   ;;  %v1121_v15 = vld [vmem:[%s1418_s1 + $0x38] ss:$20 sps:$4 sm:$0xff]   ;;  %v1117_v16 = vld [vmem:[%s1418_s1 + $0x30] ss:$20 sps:$4 sm:$0xff]  }
   0x6   :  { %v1122_v17 = vld [vmem:[%s1420_s3 + $0x40] sm:$0xff]   ;;  %v1124_v21 = vld [vmem:[%s1420_s3 + $0x48] sm:$0xff]   ;;  %v1127_v26 = vld [vmem:[%s1420_s3 + $0x10] sm:$0xff]   ;;  %v49_v52 = vsub.s32 0, %v48_v51  ;;  %v53_v54 = vsub.s32 1, %v48_v51  ;;  %v57_v59 = vsub.s32 2, %v48_v51 }
   0x7   :  { %134 = vmatpush1.bf16.msra.mxu0 %v1113_v4  ;;  %1104 = vmatpush1.bf16.msra.mxu1 %v1113_v4  ;;  %v1123_v18 = vld [vmem:[%s1420_s3] sm:$0xff]   ;;  %v1125_v22 = vld [vmem:[%s1420_s3 + $0x8] sm:$0xff]   ;;  %v1136_v27 = vld [vmem:[%s1420_s3 + $0xd0] sm:$0xff]   ;;  %v61_v0 = vsub.s32 3, %v48_v51  ;;  %v65_v5 = vsub.s32 4, %v48_v51 }
   0x8   :  { %184 = vmatprep.subr.bf16.mxu1 %v1116_v9  ;;  %1059 = vmatprep.subr.bf16.mxu0 %v1120_v13  ;;  %v1128_v19 = vld [vmem:[%s1420_s3 + $0xc0] sm:$0xff]   ;;  %v1132_v23 = vld [vmem:[%s1420_s3 + $0xc8] sm:$0xff]   ;;  %v1137_v28 = vld [vmem:[%s1420_s3 + $0x90] sm:$0xff]  }
   0x9   :  { %v1129_v20 = vld [vmem:[%s1420_s3 + $0x80] sm:$0xff]   ;;  %v1133_v24 = vld [vmem:[%s1420_s3 + $0x88] sm:$0xff]   ;;  %v1130_v29 = vld [vmem:[%s1420_s3 + $0x58] sm:$0xff]  }
   0xa   :  { %925 = vmatmul.mubr.msk.bf16.vlgmr.msra.gmra.mrb[0].mxu0 %vm124_vm0, %v31_v10  ;;  %926 = vmatmul.mubr.msk.bf16.vlgmr.msra.gmra.mrb[0].mxu1 %vm124_vm0, %v32_v11  ;;  %v1131_v30 = vld [vmem:[%s1420_s3 + $0x18] sm:$0xff]   ;;  %v1134_v31 = vld [vmem:[%s1420_s3 + $0x60] sm:$0xff]   ;;  %v1138_v34 = vld [vmem:[%s1420_s3 + $0x68] sm:$0xff]  }
   0xb   :  { %185 = vmatpush1.bf16.msra.mxu1 %v1114_v12  ;;  %216 = vmatprep.mubr.bf16.mxu1 %v1167_v1  ;;  %v1140_v32 = vld [vmem:[%s1420_s3 + $0xd8] sm:$0xff]   ;;  %v1135_v33 = vld [vmem:[%s1420_s3 + $0x20] sm:$0xff]   ;;  %v1139_v35 = vld [vmem:[%s1420_s3 + $0x28] sm:$0xff]  }
   0xc   :  { %186 = vmatprep.subr.bf16.mxu1 %v1119_v14  ;;  %1060 = vmatpush3.bf16.msra.mxu0 %v1120_v13  ;;  %v1141_v36 = vld [vmem:[%s1420_s3 + $0x98] sm:$0xff]   ;;  %v1142_v37 = vld [vmem:[%s1420_s3 + $0x70] sm:$0xff]   ;;  %v1144_v39 = vld [vmem:[%s1420_s3 + $0xe0] sm:$0xff]  }
   0xd   :  { %1061 = vmatprep.subr.bf16.mxu0 %v1121_v15  ;;  %1063 = vmatprep.mubr.msk.bf16.mxu0 %vm124_vm0, %v31_v10  ;;  %v1143_v38 = vld [vmem:[%s1420_s3 + $0x30] sm:$0xff]   ;;  %v1145_v40 = vld [vmem:[%s1420_s3 + $0xa0] sm:$0xff]   ;;  %v1146_v41 = vld [vmem:[%s1420_s3 + $0x78] sm:$0xff]  }
   0xe   :  { %v1147_v42 = vld [vmem:[%s1420_s3 + $0x38] sm:$0xff]   ;;  %v1148_v43 = vld [vmem:[%s1420_s3 + $0xe8] sm:$0xff]   ;;  %v1343_v45 = vld [vmem:[%s1420_s3 + $0x100] sm:$0xff]  }
   0xf   :  { %187 = vmatpush1.bf16.msra.mxu1 %v1117_v16  ;;  %v1149_v44 = vld [vmem:[%s1420_s3 + $0xa8] sm:$0xff]   ;;  %v1151_v46 = vld [vmem:[%s1420_s3 + $0xf0] sm:$0xff]   ;;  %v1154_v48 = vld [vmem:[%s1420_s3 + $0xf8] sm:$0xff]  }
  0x10   :  { %1062 = vmatpush3.bf16.msra.mxu0 %v1121_v15  ;;  %986 = vmatprep.subr.bf16.mxu1 %v1122_v17  ;;  %v1152_v47 = vld [vmem:[%s1420_s3 + $0xb0] sm:$0xff]   ;;  %v1155_v49 = vld [vmem:[%s1420_s3 + $0xb8] sm:$0xff]   ;;  %v45_v53 = vld [vmem:[%s1421_s2] sm:$0x1f] }
  0x11   :  { %1014 = vmatprep.subr.bf16.mxu0 %v1128_v19  ;;  %v50_v55 = vrot.slane %v45_v53, %v49_v52  ;;  %v54_v56 = vrot.slane %v45_v53, %v53_v54  ;;  %v58_v14 = vrot.slane %v45_v53, %v57_v59  ;;  %v1157_v59 = vld [vmem:[%s1420_s3 + $0x118] sm:$0xff]  }
  0x12   :  { %927 = vmatmul.mubr.msk.bf16.vlgmr.msra.gmra.mrb[4].mxu1 %vm124_vm0, %v31_v10 }
  0x13   :  { %226 = vmatprep.mubr.bf16.mxu1 %v1167_v1  ;;  %1064 = vmatmul.mubr.msk.bf16.vlgmr.msra.gmra.mrb[4].mxu0 %vm124_vm0, %v32_v11 }
  0x14   :  { %987 = vmatpush3.bf16.msra.mxu1 %v1123_v18  ;;  %1015 = vmatpush3.bf16.msra.mxu0 %v1129_v20  ;;  %v62_v18 = vrot.slane %v45_v53, %v61_v0 }
  0x15   :  { %988 = vmatprep.subr.bf16.mxu1 %v1124_v21  ;;  %1016 = vmatprep.subr.bf16.mxu0 %v1132_v23 }
  0x18   :  { %989 = vmatpush3.bf16.msra.mxu1 %v1125_v22  ;;  %1017 = vmatpush3.bf16.msra.mxu0 %v1133_v24  ;;  %v66_v22 = vrot.slane %v45_v53, %v65_v5  ;;  %v1158_v5 = vld [vmem:[%s1420_s3 + $0x120] sm:$0xff]  }
  0x19   :  { %990 = vmatprep.subr.bf16.mxu1 %v1126_v25  ;;  %1018 = vmatprep.subr.bf16.mxu0 %v1136_v27 }
  0x1a   :  { %928 = vmatmul.mubr.msk.bf16.gmra.mrb[8].mxu1 %vm124_vm0, %v32_v11 }
  0x1c   :  { %991 = vmatpush3.bf16.msra.mxu1 %v1127_v26  ;;  %1019 = vmatpush3.bf16.msra.mxu0 %v1137_v28 }
  0x1d   :  { %992 = vmatprep.subr.bf16.mxu1 %v1130_v29  ;;  %1020 = vmatprep.subr.bf16.mxu0 %v1140_v32 }
  0x20   :  { %993 = vmatpush3.bf16.msra.mxu1 %v1131_v30  ;;  %1021 = vmatpush3.bf16.msra.mxu0 %v1141_v36  ;;  %v1153_v30 = vld [vmem:[%s1420_s3 + $0x108] sm:$0xff]  }
  0x21   :  { %994 = vmatprep.subr.bf16.mxu1 %v1134_v31  ;;  %1022 = vmatprep.subr.bf16.mxu0 %v1144_v39 }
  0x24   :  { %995 = vmatpush3.bf16.msra.mxu1 %v1135_v33  ;;  %1023 = vmatpush3.bf16.msra.mxu0 %v1145_v40 }
  0x25   :  { %996 = vmatprep.subr.bf16.mxu1 %v1138_v34  ;;  %1024 = vmatprep.subr.bf16.mxu0 %v1148_v43 }
  0x28   :  { %997 = vmatpush3.bf16.msra.mxu1 %v1139_v35  ;;  %1025 = vmatpush3.bf16.msra.mxu0 %v1149_v44 }
  0x29   :  { %998 = vmatprep.subr.bf16.mxu1 %v1142_v37  ;;  %1026 = vmatprep.subr.bf16.mxu0 %v1151_v46 }
  0x2c   :  { %999 = vmatpush3.bf16.msra.mxu1 %v1143_v38  ;;  %1027 = vmatpush3.bf16.msra.mxu0 %v1152_v47 }
  0x2d   :  { %1000 = vmatprep.subr.bf16.mxu1 %v1146_v41  ;;  %1028 = vmatprep.subr.bf16.mxu0 %v1154_v48  ;;  %v1156_v48 = vld [vmem:[%s1420_s3 + $0x110] sm:$0xff]  }
  0x30   :  { %1001 = vmatpush3.bf16.msra.mxu1 %v1147_v42  ;;  %1029 = vmatpush3.bf16.msra.mxu0 %v1155_v49 }
  0x31   :  { %1067 = vmatprep.subr.bf16.mxu1 %v1343_v45 }
  0xdd   :  { %v165_v57 = vpop.f32.mrb[0].mxu0  ;;  %v175_v58 = vpop.f32.mrb[0].mxu1 }
  0xde   :  { %v166_v60 = vadd.f32 %v165_v57, %v50_v55  ;;  %v167_v61 = vpop.f32.mrb[1].mxu0  ;;  %v176_v62 = vadd.f32 %v175_v58, %v50_v55  ;;  %v177_v63 = vpop.f32.mrb[1].mxu1 }
  0xdf   :  { %v168_v1 = vadd.f32 %v167_v61, %v54_v56  ;;  %v169_v2 = vpop.f32.mrb[2].mxu0  ;;  %v178_v3 = vadd.f32 %v177_v63, %v54_v56  ;;  %v179_v4 = vpop.f32.mrb[2].mxu1 }
  0xe0   :  { %v296_v6 = vmax.f32 %v176_v62, 0.0  ;;  %v170_v7 = vadd.f32 %v169_v2, %v50_v55  ;;  %v171_v8 = vpop.f32.mrb[3].mxu0  ;;  %v180_v9 = vadd.f32 %v179_v4, %v50_v55  ;;  %v181_v10 = vpop.f32.mrb[3].mxu1  ;;  %v286_v15 = vmax.f32 %v166_v60, 0.0 }
  0xe1   :  { %v297_v11 = vmax.f32 %v178_v3, 0.0  ;;  %v172_v12 = vadd.f32 %v171_v8, %v54_v56  ;;  %v182_v13 = vadd.f32 %v181_v10, %v54_v56  ;;  %v287_v19 = vmax.f32 %v168_v1, 0.0 }
  0xe2   :  { %v291_v16 = vmax.f32 %v170_v7, 0.0  ;;  %v301_v17 = vmax.f32 %v180_v9, 0.0  ;;  %v1159_v9 = vld [vmem:[%s1420_s3 + $0x128] ss:$0 sps:$4 sm:$0xff]  }
  0xe3   :  { %v292_v20 = vmax.f32 %v172_v12, 0.0  ;;  %v302_v21 = vmax.f32 %v182_v13, 0.0  ;;  %v632_v10 = vsel %vm630_vm2, %v1159_v9, 0  ;;  %v1161_v12 = vld [vmem:[%s1422_s5 + $0x8] sm:$0xff]   ;;  %v1162_v13 = vld [vmem:[%s1422_s5 + $0x10] sm:$0xff]  }
  0xe4   :  { %v306_v23 = vpack.c.bf16 %v291_v16, %v286_v15  ;;  %v311_v24 = vpack.c.bf16 %v301_v17, %v296_v6  ;;  %v1164_v15 = vld [vmem:[%s1422_s5 + $0x20] sm:$0xff]   ;;  %v1165_v16 = vld [vmem:[%s1422_s5 + $0x28] sm:$0xff]   ;;  %v1166_v17 = vld [vmem:[%s1422_s5 + $0x30] ss:$0 sps:$4 sm:$0x33]  }
  0xe5   :  { %v307_v25 = vpack.c.bf16 %v292_v20, %v287_v19  ;;  %v312_v26 = vpack.c.bf16 %v302_v21, %v297_v11  ;;  %v218_v27 = vpop.f32.mrb[4].mxu1  ;;  %v1160_v11 = vld [vmem:[%s1422_s5] sm:$0xff]  }
  0xe6   :  { %v219_v28 = vadd.f32 %v218_v27, %v58_v14  ;;  %v220_v29 = vpop.f32.mrb[5].mxu1  ;;  %v1065_v31 = vpop.f32.mrb[4].mxu0  ;;  %1083 = vmatprep.subr.bf16.mxu0 %v1160_v11 }
  0xe7   :  { %v221_v32 = vadd.f32 %v220_v29, %v62_v18  ;;  %v222_v33 = vpop.f32.mrb[6].mxu1  ;;  %666 = vmatprep.mubr.bf16.mxu1 %v307_v25  ;;  %v280_v34 = vadd.f32 %v1065_v31, %v66_v22  ;;  %v271_v35 = vpop.f32.mrb[5].mxu0  ;;  %v931_v25 = vld [vmem:[%s1423_s4] ss:$0 sm:$0xff] }
  0xe8   :  { %v288_v36 = vmax.f32 %v219_v28, 0.0  ;;  %v223_v37 = vadd.f32 %v222_v33, %v58_v14  ;;  %v224_v38 = vpop.f32.mrb[7].mxu1  ;;  %667 = vmatmul.mubr.bf16.vlgmr.msra.gmra.mrb[12].mxu1 %v306_v23  ;;  %v272_v39 = vadd.f32 %v271_v35, %v66_v22  ;;  %v1066_v40 = vpop.f32.mrb[6].mxu0 }
  0xe9   :  { %v289_v41 = vmax.f32 %v221_v32, 0.0  ;;  %v225_v42 = vadd.f32 %v224_v38, %v62_v18  ;;  %1068 = vmatpush3.bf16.msra.mxu1 %v1343_v45  ;;  %674 = vmatprep.mubr.bf16.mxu1 %v312_v26  ;;  %v300_v43 = vmax.f32 %v280_v34, 0.0  ;;  %v283_v44 = vadd.f32 %v1066_v40, %v66_v22  ;;  %v274_v46 = vpop.f32.mrb[7].mxu0 }
  0xea   :  { %v293_v47 = vmax.f32 %v223_v37, 0.0  ;;  %1069 = vmatprep.subr.bf16.mxu1 %v1153_v30  ;;  %v290_v49 = vmax.f32 %v272_v39, 0.0  ;;  %v275_v50 = vadd.f32 %v274_v46, %v66_v22 }
  0xeb   :  { %v294_v51 = vmax.f32 %v225_v42, 0.0  ;;  %v305_v52 = vmax.f32 %v283_v44, 0.0 }
  0xec   :  { %v308_v53 = vpack.c.bf16 %v293_v47, %v288_v36  ;;  %v295_v54 = vmax.f32 %v275_v50, 0.0 }
  0xed   :  { %v309_v55 = vpack.c.bf16 %v294_v51, %v289_v41  ;;  %1070 = vmatpush3.bf16.msra.mxu1 %v1153_v30  ;;  %v228_v56 = vpop.f32.mrb[8].mxu1  ;;  %v315_v45 = vpack.c.bf16 %v305_v52, %v300_v43 }
  0xee   :  { %v229_v57 = vadd.f32 %v228_v56, %v58_v14  ;;  %v230_v58 = vpop.f32.mrb[9].mxu1  ;;  %1071 = vmatprep.subr.bf16.mxu1 %v1156_v48  ;;  %v310_v60 = vpack.c.bf16 %v295_v54, %v290_v49 }
  0xef   :  { %v231_v61 = vadd.f32 %v230_v58, %v62_v18  ;;  %v232_v62 = vpop.f32.mrb[10].mxu1  ;;  %715 = vmatprep.mubr.bf16.mxu0 %v309_v55 }
  0xf0   :  { %v298_v63 = vmax.f32 %v229_v57, 0.0  ;;  %v233_v0 = vadd.f32 %v232_v62, %v58_v14  ;;  %v234_v1 = vpop.f32.mrb[11].mxu1  ;;  %675 = vmatmul.mubr.bf16.gmra.mrb[16].mxu1 %v311_v24  ;;  %716 = vmatmul.mubr.bf16.vlgmr.msra.gmra.mrb[8].mxu0 %v308_v53  ;;  %v1163_v14 = vld [vmem:[%s1422_s5 + $0x18] sm:$0xff]  }
  0xf1   :  { %v299_v2 = vmax.f32 %v231_v61, 0.0  ;;  %v235_v3 = vadd.f32 %v234_v1, %v62_v18  ;;  %1072 = vmatpush3.bf16.msra.mxu1 %v1156_v48  ;;  %1079 = vmatprep.mubr.msk.bf16.mxu1 %vm623_vm1, %v310_v60  ;;  %v855_v18 = vsel %vm853_vm3, %v1166_v17, 0 }
  0xf2   :  { %v303_v4 = vmax.f32 %v233_v0, 0.0  ;;  %1073 = vmatprep.subr.bf16.mxu1 %v1157_v59  ;;  %1084 = vmatpush3.bf16.msra.mxu0 %v1160_v11 }
  0xf3   :  { %v304_v6 = vmax.f32 %v235_v3, 0.0  ;;  %1085 = vmatprep.subr.bf16.mxu0 %v1161_v12 }
  0xf4   :  { %v313_v7 = vpack.c.bf16 %v303_v4, %v298_v63 }
  0xf5   :  { %v314_v8 = vpack.c.bf16 %v304_v6, %v299_v2  ;;  %1074 = vmatpush3.bf16.msra.mxu1 %v1157_v59  ;;  %v972_v2 = vld [vmem:[%s1424_s6] ss:$0 sm:$0xff] }
  0xf6   :  { %1075 = vmatprep.subr.bf16.mxu1 %v1158_v5  ;;  %1086 = vmatpush3.bf16.msra.mxu0 %v1161_v12 }
  0xf7   :  { %723 = vmatprep.mubr.bf16.mxu0 %v314_v8  ;;  %1087 = vmatprep.subr.bf16.mxu0 %v1162_v13 }
  0xf8   :  { %724 = vmatmul.mubr.bf16.gmra.mrb[12].mxu0 %v313_v7 }
  0xf9   :  { %1076 = vmatpush3.bf16.msra.mxu1 %v1158_v5 }
  0xfa   :  { %1105 = vmatprep.subr.msk.bf16.mxu1 %vm630_vm2, %v1159_v9  ;;  %1088 = vmatpush3.bf16.msra.mxu0 %v1162_v13 }
  0xfb   :  { %1089 = vmatprep.subr.bf16.mxu0 %v1163_v14 }
  0xfd   :  { %1078 = vmatpush3.bf16.msra.mxu1 %v632_v10 }
  0xfe   :  { %1090 = vmatpush3.bf16.msra.mxu0 %v1163_v14 }
  0xff   :  { %1091 = vmatprep.subr.bf16.mxu0 %v1164_v15 }
 0x100   :  { %1080 = vmatmul.mubr.msk.bf16.vlgmr.msra.gmra.mrb[20].mxu1 %vm623_vm1, %v315_v45 }
 0x102   :  { %1092 = vmatpush3.bf16.msra.mxu0 %v1164_v15 }
 0x103   :  { %1093 = vmatprep.subr.bf16.mxu0 %v1165_v16 }
 0x106   :  { %1094 = vmatpush3.bf16.msra.mxu0 %v1165_v16 }
 0x107   :  { %1106 = vmatprep.subr.msk.bf16.mxu0 %vm853_vm3, %v1166_v17 }
 0x10a   :  { %1096 = vmatpush3.bf16.msra.mxu0 %v855_v18 }
 0x1bb   :  { %v1002_v19 = vpop.f32.mrb[12].mxu1 }
 0x1bc   :  { %v1003_v20 = vpop.f32.mrb[13].mxu1 }
 0x1bd   :  { %v1004_v21 = vadd.f32 %v1003_v20, %v1002_v19  ;;  %v1005_v22 = vpop.f32.mrb[14].mxu1 }
 0x1be   :  { %v1006_v23 = vpop.f32.mrb[15].mxu1 }
 0x1bf   :  { %v1007_v24 = vadd.f32 %v1006_v23, %v1005_v22  ;;  %v669_v30 = vadd.f32 %v1004_v21, %v931_v25 }
 0x1c1   :  { %v672_v37 = vadd.f32 %v1007_v24, %v931_v25 }
 0x1c3   :  { %v1008_v26 = vpop.f32.mrb[16].mxu1  ;;  %v1030_v27 = vpop.f32.mrb[8].mxu0 }
 0x1c4   :  { %v1009_v28 = vpop.f32.mrb[17].mxu1  ;;  %v1031_v29 = vpop.f32.mrb[9].mxu0 }
 0x1c5   :  { %v1010_v31 = vadd.f32 %v1009_v28, %v1008_v26  ;;  %v1032_v32 = vadd.f32 %v1031_v29, %v1030_v27  ;;  %v1011_v33 = vpop.f32.mrb[18].mxu1  ;;  %v1033_v34 = vpop.f32.mrb[10].mxu0 }
 0x1c6   :  { %v1012_v35 = vpop.f32.mrb[19].mxu1  ;;  %v1034_v36 = vpop.f32.mrb[11].mxu0 }
 0x1c7   :  { %v1013_v38 = vadd.f32 %v1012_v35, %v1011_v33  ;;  %v1035_v39 = vadd.f32 %v1034_v36, %v1033_v34  ;;  %v718_v40 = vadd.f32 %v1032_v32, %v669_v30  ;;  %v677_v44 = vadd.f32 %v1010_v31, %v931_v25 }
 0x1c9   :  { %v721_v41 = vadd.f32 %v1035_v39, %v672_v37  ;;  %v680_v49 = vadd.f32 %v1013_v38, %v931_v25 }
 0x1cb   :  { %v1036_v42 = vpop.f32.mrb[12].mxu0 }
 0x1cc   :  { %v1037_v43 = vpop.f32.mrb[13].mxu0 }
 0x1cd   :  { %v1038_v46 = vadd.f32 %v1037_v43, %v1036_v42  ;;  %v1039_v47 = vpop.f32.mrb[14].mxu0 }
 0x1ce   :  { %v1040_v48 = vpop.f32.mrb[15].mxu0 }
 0x1cf   :  { %v1041_v50 = vadd.f32 %v1040_v48, %v1039_v47  ;;  %v726_v51 = vadd.f32 %v1038_v46, %v677_v44 }
 0x1d1   :  { %v729_v52 = vadd.f32 %v1041_v50, %v680_v49 }
 0x1d3   :  { %v1081_v53 = vpop.f32.mrb[20].mxu1 }
 0x1d4   :  { %v775_v54 = vadd.f32 %v1081_v53, %v726_v51  ;;  %v766_v55 = vpop.f32.mrb[21].mxu1 }
 0x1d5   :  { %v767_v56 = vadd.f32 %v766_v55, %v718_v40  ;;  %v1082_v45 = vpop.f32.mrb[22].mxu1 }
 0x1d6   :  { %v778_v57 = vadd.f32 %v1082_v45, %v729_v52  ;;  %v769_v58 = vpop.f32.mrb[23].mxu1  ;;  %v783_v60 = vmax.f32 %v775_v54, 0.0 }
 0x1d7   :  { %v770_v59 = vadd.f32 %v769_v58, %v721_v41  ;;  %v781_v62 = vmax.f32 %v767_v56, 0.0 }
 0x1d8   :  { %v784_v61 = vmax.f32 %v778_v57, 0.0 }
 0x1d9   :  { %v782_v63 = vmax.f32 %v770_v59, 0.0 }
 0x1da   :  { %v786_v0 = vpack.c.bf16 %v784_v61, %v783_v60 }
 0x1db   :  { %v785_v1 = vpack.c.bf16 %v782_v63, %v781_v62 }
 0x1dd   :  { %1097 = vmatprep.mubr.msk.bf16.mxu0 %vm846_vm4, %v785_v1 }
 0x1de   :  { %1098 = vmatmul.mubr.msk.bf16.vlgmr.msra.gmra.mrb[16].mxu0 %vm846_vm4, %v786_v0 }
 0x2b1   :  { %v1099_v3 = vpop.f32.mrb[16].mxu0 }
 0x2b2   :  { %v900_v4 = vadd.f32 %v1099_v3, %v972_v2  ;;  %v891_v5 = vpop.f32.mrb[17].mxu0 }
 0x2b3   :  { %v892_v6 = vadd.f32 %v972_v2, %v891_v5  ;;  %v1100_v7 = vpop.f32.mrb[18].mxu0 }
 0x2b4   :  { %909 = vst.msk [vmem:[%s1425_s7 + $0x10] sm:$0xff] %vm906_vm5, %v900_v4  ;;  %v903_v8 = vadd.f32 %v1100_v7, %v972_v2  ;;  %v894_v9 = vpop.f32.mrb[19].mxu0 }
 0x2b5   :  { %907 = vst.msk [vmem:[%s1425_s7] sm:$0xff] %vm906_vm5, %v892_v6  ;;  %v895_v10 = vadd.f32 %v972_v2, %v894_v9 }
 0x2b6   :  { %910 = vst.msk [vmem:[%s1425_s7 + $0x18] sm:$0xff] %vm906_vm5, %v903_v8 }
 0x2b7   :  { %908 = vst.msk [vmem:[%s1425_s7 + $0x8] sm:$0xff] %vm906_vm5, %v895_v10 }

</bundles_post_ra>
